<compile_context>
chip_gen: v6e
topology: v6e:2x2x1
jax: 0.10.0
libtpu: 0.0.40
codegen_flags: <defaults>
</compile_context>

<pallas_src>
import functools

import jax
import jax.numpy as jnp
from jax.experimental import pallas as pl
from jax.experimental.pallas import tpu as pltpu


F_PAD = 128   # lane-dense feature width for all activations / weights / outputs
G_PAD = 8     # sublane-dense number of pooled (graph) rows


def _round_up(v, m):
    return ((v + m - 1) // m) * m


def _pad2(a, rows, cols):
    r, c = a.shape
    return jnp.pad(a, ((0, rows - r), (0, cols - c)))


# ---------------------------------------------------------------------------
# Fused Pallas kernel: the entire GCN5 forward.
# ---------------------------------------------------------------------------
def _gcn5_fused_kernel(a_ref, p_ref, x_ref,
                       w1, b1, w2, b2, w3, b3, w4, b4, w5, b5, wfc, bfc,
                       o_ref):
    """One-shot GCN5 forward.

    a_ref : [Np, Np]     bf16  normalized adjacency  D^-1/2 (A + I) D^-1/2
    p_ref : [G_PAD, Np]  bf16  mean-pool matrix (zero rows beyond num_graphs)
    x_ref : [Np, F_PAD]  bf16  node features, zero-padded to 128 lanes
    w*    : [F_PAD, F_PAD] bf16 zero-padded weights;  b*: [1, F_PAD] f32
    o_ref : [G_PAD, F_PAD] f32 logits (valid block is [:num_graphs, :num_classes])
    """
    a = a_ref[...]          # bf16, loaded once, reused by all 5 layers
    h = x_ref[...]          # bf16 activations, resident on-chip throughout

    # 5 x (GCNConv + ReLU):  h <- relu(A @ (h @ W) + b)
    # Static Python unroll; both matmuls hit the MXU with bf16 inputs and f32
    # accumulation; bias/ReLU epilogue in f32 on the VPU.
    for w_ref, b_ref in ((w1, b1), (w2, b2), (w3, b3), (w4, b4), (w5, b5)):
        xw = jnp.dot(h, w_ref[...], preferred_element_type=jnp.float32)
        hw = jnp.dot(a, xw.astype(jnp.bfloat16),
                     preferred_element_type=jnp.float32)
        h = jnp.maximum(hw + b_ref[...], 0.0).astype(jnp.bfloat16)

    # global_mean_pool FIRST (shrinks M from N nodes to G graphs), then fc.
    # F.dropout(p=0.5, training=False) is the identity at inference time.
    pooled = jnp.dot(p_ref[...], h, preferred_element_type=jnp.float32)
    out = jnp.dot(pooled.astype(jnp.bfloat16), wfc[...],
                  preferred_element_type=jnp.float32) + bfc[...]
    o_ref[...] = out        # lane-dense [G_PAD, 128] f32 store


@jax.jit
def gcn5_pallas(a_norm, pool, x_pad, padded):
    """a_norm: [Np,Np] bf16, pool: [G_PAD,Np] bf16, x_pad: [Np,F_PAD] bf16."""
    vmem = pl.BlockSpec(memory_space=pltpu.MemorySpace.VMEM)
    args = (a_norm, pool, x_pad,
            padded["w1"], padded["b1"], padded["w2"], padded["b2"],
            padded["w3"], padded["b3"], padded["w4"], padded["b4"],
            padded["w5"], padded["b5"], padded["w_fc"], padded["b_fc"])
    return pl.pallas_call(
        _gcn5_fused_kernel,
        out_shape=jax.ShapeDtypeStruct((G_PAD, F_PAD), jnp.float32),
        in_specs=[vmem] * len(args),
        out_specs=vmem,
    )(*args)


# ---------------------------------------------------------------------------
# Glue (plain JAX, computed ONCE per graph, not per forward pass).
# ---------------------------------------------------------------------------
def build_norm_adj(edge_index, num_nodes):
    """D^{-1/2} (A + I) D^{-1/2}; duplicate edges sum, self-loop always added."""
    src, dst = edge_index[0], edge_index[1]
    adj = jnp.zeros((num_nodes, num_nodes), jnp.float32).at[dst, src].add(1.0)
    adj = adj + jnp.eye(num_nodes, dtype=jnp.float32)   # PyG add_self_loops
    deg = adj.sum(axis=1)
    dinv = jax.lax.rsqrt(deg)
    return dinv[:, None] * adj * dinv[None, :]


def build_mean_pool(batch, num_graphs, num_nodes):
    """P[g, i] = 1/|graph g| if batch[i] == g else 0  (global_mean_pool)."""
    onehot = (batch[None, :] == jnp.arange(num_graphs)[:, None]).astype(jnp.float32)
    counts = jnp.maximum(onehot.sum(axis=1, keepdims=True), 1.0)
    return onehot / counts


# ---------------------------------------------------------------------------
# Parameters: init (deterministic, glorot-style) and one-time padding to 128
# lanes / bf16 for MXU consumption.
# ---------------------------------------------------------------------------
def init_params(key, num_features, num_classes):
    dims = [(num_features, 128), (128, 128), (128, 128), (128, 64), (64, 32)]
    params = {}
    keys = jax.random.split(key, len(dims) + 1)
    for i, (fi, fo) in enumerate(dims):
        scale = jnp.sqrt(2.0 / (fi + fo))
        params[f"w{i+1}"] = scale * jax.random.normal(keys[i], (fi, fo), jnp.float32)
        params[f"b{i+1}"] = jnp.zeros((fo,), jnp.float32)
    scale = jnp.sqrt(2.0 / (32 + num_classes))
    params["w_fc"] = scale * jax.random.normal(keys[-1], (32, num_classes), jnp.float32)
    params["b_fc"] = jnp.zeros((num_classes,), jnp.float32)
    return params


def pad_params(params):
    """Zero-pad every weight to [128,128] bf16 and every bias to [1,128] f32."""
    padded = {}
    for name in ("w1", "w2", "w3", "w4", "w5", "w_fc"):
        padded[name] = _pad2(params[name], F_PAD, F_PAD).astype(jnp.bfloat16)
    for name in ("b1", "b2", "b3", "b4", "b5", "b_fc"):
        b = params[name]
        padded[name] = jnp.pad(b, (0, F_PAD - b.shape[0])).reshape(1, F_PAD)
    return padded


# ---------------------------------------------------------------------------
# Pure-JAX f32 reference (same semantics as the PyTorch module in eval mode).
# ---------------------------------------------------------------------------
def ref_forward(params, x, a_norm, pool):
    h = x
    for i in range(1, 6):
        h = jnp.maximum(a_norm @ (h @ params[f"w{i}"]) + params[f"b{i}"], 0.0)
    return (pool @ h) @ params["w_fc"] + params["b_fc"]


if __name__ == "__main__":
    key = jax.random.PRNGKey(0)
    k_edge_s, k_edge_d, k_x, k_param = jax.random.split(key, 4)

    num_nodes = 32
    num_edges = 64
    num_graphs = 2
    num_features = 16
    num_classes = 4

    x = jax.random.normal(k_x, (num_nodes, num_features), jnp.float32)
    src = jax.random.randint(k_edge_s, (num_edges,), 0, num_nodes)
    dst = jax.random.randint(k_edge_d, (num_edges,), 0, num_nodes)
    edge_index = jnp.stack([src, dst], axis=0)          # [2, E]
    batch = jnp.concatenate(
        [jnp.zeros((num_nodes // 2,), jnp.int32), jnp.ones((num_nodes // 2,), jnp.int32)]
    )                                                   # node -> graph assignment

    params = init_params(k_param, num_features, num_classes)

    # Hoisted one-time graph preprocessing (functions of the static graph only).
    a_norm = build_norm_adj(edge_index, num_nodes)
    pool = build_mean_pool(batch, num_graphs, num_nodes)
    padded = pad_params(params)

    # Pad operands for the fused kernel: sublane-multiple node count, 128-lane
    # features, bf16 MXU inputs.
    n_pad = _round_up(num_nodes, 8)
    a_pad = _pad2(a_norm, n_pad, n_pad).astype(jnp.bfloat16)
    p_pad = _pad2(pool, G_PAD, n_pad).astype(jnp.bfloat16)
    x_pad = _pad2(x, n_pad, F_PAD).astype(jnp.bfloat16)

    out_full = gcn5_pallas(a_pad, p_pad, x_pad, padded)
    out = out_full[:num_graphs, :num_classes]
    out = jax.block_until_ready(out)

    # Validate against a pure-JAX f32 reference (bf16 MXU inputs => loose tol).
    ref = ref_forward(params, x, a_norm, pool)
    assert out.shape == (num_graphs, num_classes)
    assert bool(jnp.all(jnp.isfinite(out)))
    assert bool(jnp.allclose(out, ref, atol=1e-1, rtol=1e-1))

    print("KERNEL_OK")
</pallas_src>

<mosaic_0001>
module attributes {stable_mosaic.version = 11 : i64} {
  func.func @_gcn5_fused_kernel(%arg0: memref<32x32xbf16, #tpu.memory_space<vmem>>, %arg1: memref<8x32xbf16, #tpu.memory_space<vmem>>, %arg2: memref<32x128xbf16, #tpu.memory_space<vmem>>, %arg3: memref<128x128xbf16, #tpu.memory_space<vmem>>, %arg4: memref<1x128xf32, #tpu.memory_space<vmem>>, %arg5: memref<128x128xbf16, #tpu.memory_space<vmem>>, %arg6: memref<1x128xf32, #tpu.memory_space<vmem>>, %arg7: memref<128x128xbf16, #tpu.memory_space<vmem>>, %arg8: memref<1x128xf32, #tpu.memory_space<vmem>>, %arg9: memref<128x128xbf16, #tpu.memory_space<vmem>>, %arg10: memref<1x128xf32, #tpu.memory_space<vmem>>, %arg11: memref<128x128xbf16, #tpu.memory_space<vmem>>, %arg12: memref<1x128xf32, #tpu.memory_space<vmem>>, %arg13: memref<128x128xbf16, #tpu.memory_space<vmem>>, %arg14: memref<1x128xf32, #tpu.memory_space<vmem>>, %arg15: memref<8x128xf32, #tpu.memory_space<vmem>>) attributes {dimension_semantics = [], scalar_prefetch = 0 : i64, scratch_operands = 0 : i64, tpu.core_type = #tpu.core_type<tc>} {
    %c0 = arith.constant 0 : index
    %c0_0 = arith.constant 0 : index
    %0 = vector.load %arg0[%c0, %c0_0] : memref<32x32xbf16, #tpu.memory_space<vmem>>, vector<32x32xbf16>
    %c0_1 = arith.constant 0 : index
    %c0_2 = arith.constant 0 : index
    %1 = vector.load %arg2[%c0_1, %c0_2] : memref<32x128xbf16, #tpu.memory_space<vmem>>, vector<32x128xbf16>
    %c0_3 = arith.constant 0 : index
    %c0_4 = arith.constant 0 : index
    %2 = vector.load %arg3[%c0_3, %c0_4] : memref<128x128xbf16, #tpu.memory_space<vmem>>, vector<128x128xbf16>
    %cst = arith.constant dense<0.000000e+00> : vector<32x128xf32>
    %3 = tpu.matmul %1, %2, %cst {dimension_numbers = #tpu.dot_dimension_numbers<[1], [0], [0], [1], [0, 0, 1, 1], [], []>} : vector<32x128xbf16>, vector<128x128xbf16>, vector<32x128xf32> -> vector<32x128xf32>
    %4 = arith.truncf %3 : vector<32x128xf32> to vector<32x128xbf16>
    %cst_5 = arith.constant dense<0.000000e+00> : vector<32x128xf32>
    %5 = tpu.matmul %0, %4, %cst_5 {dimension_numbers = #tpu.dot_dimension_numbers<[1], [0], [0], [1], [0, 0, 1, 1], [], []>} : vector<32x32xbf16>, vector<32x128xbf16>, vector<32x128xf32> -> vector<32x128xf32>
    %c0_6 = arith.constant 0 : index
    %c0_7 = arith.constant 0 : index
    %6 = vector.load %arg4[%c0_6, %c0_7] : memref<1x128xf32, #tpu.memory_space<vmem>>, vector<1x128xf32>
    %7 = vector.broadcast %6 : vector<1x128xf32> to vector<32x128xf32>
    %8 = arith.addf %5, %7 : vector<32x128xf32>
    %cst_8 = arith.constant 0.000000e+00 : f32
    %9 = vector.broadcast %cst_8 : f32 to vector<32x128xf32>
    %10 = arith.maximumf %8, %9 : vector<32x128xf32>
    %11 = arith.truncf %10 : vector<32x128xf32> to vector<32x128xbf16>
    %c0_9 = arith.constant 0 : index
    %c0_10 = arith.constant 0 : index
    %12 = vector.load %arg5[%c0_9, %c0_10] : memref<128x128xbf16, #tpu.memory_space<vmem>>, vector<128x128xbf16>
    %cst_11 = arith.constant dense<0.000000e+00> : vector<32x128xf32>
    %13 = tpu.matmul %11, %12, %cst_11 {dimension_numbers = #tpu.dot_dimension_numbers<[1], [0], [0], [1], [0, 0, 1, 1], [], []>} : vector<32x128xbf16>, vector<128x128xbf16>, vector<32x128xf32> -> vector<32x128xf32>
    %14 = arith.truncf %13 : vector<32x128xf32> to vector<32x128xbf16>
    %cst_12 = arith.constant dense<0.000000e+00> : vector<32x128xf32>
    %15 = tpu.matmul %0, %14, %cst_12 {dimension_numbers = #tpu.dot_dimension_numbers<[1], [0], [0], [1], [0, 0, 1, 1], [], []>} : vector<32x32xbf16>, vector<32x128xbf16>, vector<32x128xf32> -> vector<32x128xf32>
    %c0_13 = arith.constant 0 : index
    %c0_14 = arith.constant 0 : index
    %16 = vector.load %arg6[%c0_13, %c0_14] : memref<1x128xf32, #tpu.memory_space<vmem>>, vector<1x128xf32>
    %17 = vector.broadcast %16 : vector<1x128xf32> to vector<32x128xf32>
    %18 = arith.addf %15, %17 : vector<32x128xf32>
    %cst_15 = arith.constant 0.000000e+00 : f32
    %19 = vector.broadcast %cst_15 : f32 to vector<32x128xf32>
    %20 = arith.maximumf %18, %19 : vector<32x128xf32>
    %21 = arith.truncf %20 : vector<32x128xf32> to vector<32x128xbf16>
    %c0_16 = arith.constant 0 : index
    %c0_17 = arith.constant 0 : index
    %22 = vector.load %arg7[%c0_16, %c0_17] : memref<128x128xbf16, #tpu.memory_space<vmem>>, vector<128x128xbf16>
    %cst_18 = arith.constant dense<0.000000e+00> : vector<32x128xf32>
    %23 = tpu.matmul %21, %22, %cst_18 {dimension_numbers = #tpu.dot_dimension_numbers<[1], [0], [0], [1], [0, 0, 1, 1], [], []>} : vector<32x128xbf16>, vector<128x128xbf16>, vector<32x128xf32> -> vector<32x128xf32>
    %24 = arith.truncf %23 : vector<32x128xf32> to vector<32x128xbf16>
    %cst_19 = arith.constant dense<0.000000e+00> : vector<32x128xf32>
    %25 = tpu.matmul %0, %24, %cst_19 {dimension_numbers = #tpu.dot_dimension_numbers<[1], [0], [0], [1], [0, 0, 1, 1], [], []>} : vector<32x32xbf16>, vector<32x128xbf16>, vector<32x128xf32> -> vector<32x128xf32>
    %c0_20 = arith.constant 0 : index
    %c0_21 = arith.constant 0 : index
    %26 = vector.load %arg8[%c0_20, %c0_21] : memref<1x128xf32, #tpu.memory_space<vmem>>, vector<1x128xf32>
    %27 = vector.broadcast %26 : vector<1x128xf32> to vector<32x128xf32>
    %28 = arith.addf %25, %27 : vector<32x128xf32>
    %cst_22 = arith.constant 0.000000e+00 : f32
    %29 = vector.broadcast %cst_22 : f32 to vector<32x128xf32>
    %30 = arith.maximumf %28, %29 : vector<32x128xf32>
    %31 = arith.truncf %30 : vector<32x128xf32> to vector<32x128xbf16>
    %c0_23 = arith.constant 0 : index
    %c0_24 = arith.constant 0 : index
    %32 = vector.load %arg9[%c0_23, %c0_24] : memref<128x128xbf16, #tpu.memory_space<vmem>>, vector<128x128xbf16>
    %cst_25 = arith.constant dense<0.000000e+00> : vector<32x128xf32>
    %33 = tpu.matmul %31, %32, %cst_25 {dimension_numbers = #tpu.dot_dimension_numbers<[1], [0], [0], [1], [0, 0, 1, 1], [], []>} : vector<32x128xbf16>, vector<128x128xbf16>, vector<32x128xf32> -> vector<32x128xf32>
    %34 = arith.truncf %33 : vector<32x128xf32> to vector<32x128xbf16>
    %cst_26 = arith.constant dense<0.000000e+00> : vector<32x128xf32>
    %35 = tpu.matmul %0, %34, %cst_26 {dimension_numbers = #tpu.dot_dimension_numbers<[1], [0], [0], [1], [0, 0, 1, 1], [], []>} : vector<32x32xbf16>, vector<32x128xbf16>, vector<32x128xf32> -> vector<32x128xf32>
    %c0_27 = arith.constant 0 : index
    %c0_28 = arith.constant 0 : index
    %36 = vector.load %arg10[%c0_27, %c0_28] : memref<1x128xf32, #tpu.memory_space<vmem>>, vector<1x128xf32>
    %37 = vector.broadcast %36 : vector<1x128xf32> to vector<32x128xf32>
    %38 = arith.addf %35, %37 : vector<32x128xf32>
    %cst_29 = arith.constant 0.000000e+00 : f32
    %39 = vector.broadcast %cst_29 : f32 to vector<32x128xf32>
    %40 = arith.maximumf %38, %39 : vector<32x128xf32>
    %41 = arith.truncf %40 : vector<32x128xf32> to vector<32x128xbf16>
    %c0_30 = arith.constant 0 : index
    %c0_31 = arith.constant 0 : index
    %42 = vector.load %arg11[%c0_30, %c0_31] : memref<128x128xbf16, #tpu.memory_space<vmem>>, vector<128x128xbf16>
    %cst_32 = arith.constant dense<0.000000e+00> : vector<32x128xf32>
    %43 = tpu.matmul %41, %42, %cst_32 {dimension_numbers = #tpu.dot_dimension_numbers<[1], [0], [0], [1], [0, 0, 1, 1], [], []>} : vector<32x128xbf16>, vector<128x128xbf16>, vector<32x128xf32> -> vector<32x128xf32>
    %44 = arith.truncf %43 : vector<32x128xf32> to vector<32x128xbf16>
    %cst_33 = arith.constant dense<0.000000e+00> : vector<32x128xf32>
    %45 = tpu.matmul %0, %44, %cst_33 {dimension_numbers = #tpu.dot_dimension_numbers<[1], [0], [0], [1], [0, 0, 1, 1], [], []>} : vector<32x32xbf16>, vector<32x128xbf16>, vector<32x128xf32> -> vector<32x128xf32>
    %c0_34 = arith.constant 0 : index
    %c0_35 = arith.constant 0 : index
    %46 = vector.load %arg12[%c0_34, %c0_35] : memref<1x128xf32, #tpu.memory_space<vmem>>, vector<1x128xf32>
    %47 = vector.broadcast %46 : vector<1x128xf32> to vector<32x128xf32>
    %48 = arith.addf %45, %47 : vector<32x128xf32>
    %cst_36 = arith.constant 0.000000e+00 : f32
    %49 = vector.broadcast %cst_36 : f32 to vector<32x128xf32>
    %50 = arith.maximumf %48, %49 : vector<32x128xf32>
    %51 = arith.truncf %50 : vector<32x128xf32> to vector<32x128xbf16>
    %c0_37 = arith.constant 0 : index
    %c0_38 = arith.constant 0 : index
    %52 = vector.load %arg1[%c0_37, %c0_38] : memref<8x32xbf16, #tpu.memory_space<vmem>>, vector<8x32xbf16>
    %cst_39 = arith.constant dense<0.000000e+00> : vector<8x128xf32>
    %53 = tpu.matmul %52, %51, %cst_39 {dimension_numbers = #tpu.dot_dimension_numbers<[1], [0], [0], [1], [0, 0, 1, 1], [], []>} : vector<8x32xbf16>, vector<32x128xbf16>, vector<8x128xf32> -> vector<8x128xf32>
    %54 = arith.truncf %53 : vector<8x128xf32> to vector<8x128xbf16>
    %c0_40 = arith.constant 0 : index
    %c0_41 = arith.constant 0 : index
    %55 = vector.load %arg13[%c0_40, %c0_41] : memref<128x128xbf16, #tpu.memory_space<vmem>>, vector<128x128xbf16>
    %cst_42 = arith.constant dense<0.000000e+00> : vector<8x128xf32>
    %56 = tpu.matmul %54, %55, %cst_42 {dimension_numbers = #tpu.dot_dimension_numbers<[1], [0], [0], [1], [0, 0, 1, 1], [], []>} : vector<8x128xbf16>, vector<128x128xbf16>, vector<8x128xf32> -> vector<8x128xf32>
    %c0_43 = arith.constant 0 : index
    %c0_44 = arith.constant 0 : index
    %57 = vector.load %arg14[%c0_43, %c0_44] : memref<1x128xf32, #tpu.memory_space<vmem>>, vector<1x128xf32>
    %58 = vector.broadcast %57 : vector<1x128xf32> to vector<8x128xf32>
    %59 = arith.addf %56, %58 : vector<8x128xf32>
    %c0_45 = arith.constant 0 : index
    %c0_46 = arith.constant 0 : index
    %60 = vector.load %arg15[%c0_45, %c0_46] : memref<8x128xf32, #tpu.memory_space<vmem>>, vector<8x128xf32>
    tpu.vector_store %arg15[%c0_45, %c0_46], %59 {strides = array<i32>} : memref<8x128xf32, #tpu.memory_space<vmem>>, vector<8x128xf32>,
    return
  }
}

</mosaic_0001>

<bundles_post_ra>
// kernel: gcn5_pallas.1
= control target key start
LH: loop header
LB: loop body
LE: loop exit
PB: predicated region body
PF: predicated region fallthrough
CT: control target
= control target key end

     0   :  { %20 = vsyncpa [#allocation3], 0  ;;  %s2060_s0 = inlined_call_operand.hbm [shape: bf16[32,32], index: 0, kind: input, shape index: {}]   ;;  %s2061_s1 = inlined_call_operand.hbm [shape: bf16[8,32], index: 1, kind: input, shape index: {}]   ;;  %s2062_s2 = inlined_call_operand.hbm [shape: bf16[32,128], index: 2, kind: input, shape index: {}]   ;;  %s2063_s3 = inlined_call_operand.hbm [shape: bf16[128,128], index: 3, kind: input, shape index: {}]   ;;  %s2064_s4 = inlined_call_operand.vmem [shape: f32[1,128], index: 4, kind: input, shape index: {}]   ;;  %s2065_s5 = inlined_call_operand.hbm [shape: bf16[128,128], index: 5, kind: input, shape index: {}]   ;;  %s2066_s6 = inlined_call_operand.vmem [shape: f32[1,128], index: 6, kind: input, shape index: {}]   ;;  %s2067_s7 = inlined_call_operand.hbm [shape: bf16[128,128], index: 7, kind: input, shape index: {}]   ;;  %s2068_s8 = inlined_call_operand.vmem [shape: f32[1,128], index: 8, kind: input, shape index: {}]   ;;  %s2069_s9 = inlined_call_operand.hbm [shape: bf16[128,128], index: 9, kind: input, shape index: {}]   ;;  %s2070_s10 = inlined_call_operand.vmem [shape: f32[1,128], index: 10, kind: input, shape index: {}]   ;;  %s2071_s11 = inlined_call_operand.hbm [shape: bf16[128,128], index: 11, kind: input, shape index: {}]   ;;  %s2072_s12 = inlined_call_operand.vmem [shape: f32[1,128], index: 12, kind: input, shape index: {}]   ;;  %s2073_s13 = inlined_call_operand.hbm [shape: bf16[128,128], index: 13, kind: input, shape index: {}]   ;;  %s2074_s14 = inlined_call_operand.vmem [shape: f32[1,128], index: 14, kind: input, shape index: {}]   ;;  %s2075_s15 = inlined_call_operand.hbm [shape: f32[8,128], index: 15, kind: output, shape index: {}]  }
   0x1   :  { %21 = vsyncpa [#allocation6], 0 }
   0x2   :  { %22 = vsyncpa [#allocation9], 0 }
   0x3   :  { %23 = vsyncpa [#allocation12], 0 }
   0x4   :  { %24 = vsyncpa [#allocation15], 0 }
   0x5   :  { %25 = vsyncpa [#allocation4], 0  ;;  %s1867_s18 = smov [#allocation5]  }
   0x6   :  { %s44_s19 = sshll.u32 %s1867_s18, 4  ;;  %s45_s19 = int_to_ptr.vmem [resolvable:$true] %s44_s19 }
   0x7   :  { %s1663_s20 = scalar_lea.vmem %s45_s19, 64  ;;  %p1668_p1 = scmp.lt.s32.totalorder %s45_s19, %s45_s19 }
   0x8   :  { %p1664_p0 = scmp.ne.s32.totalorder %s45_s19, %s1663_s20  ;;  %p1669_p2 = scmp.lt.s32.totalorder %s1663_s20, %s1663_s20 }
   0xa   :  { %p1670_p3 = por %p1669_p2, %p1668_p1 }
   0xc   :  { %p1671_p4 = pnand %p1670_p3, %p1664_p0 }
   0xe   :  { %1674 = shalt.err (!%p1671_p4)
}
   0xf   :  { %47 = dma.hbm_to_vmem [thread:$0]  %s2061_s1, 64, %s45_s19, [#allocation6]  }
  0x10   :  { %s1868_s23 = smov [#allocation8]   ;;  %s1869_s25 = smov [#allocation11]  }
  0x11   :  { %s65_s24 = sshll.u32 %s1868_s23, 4  ;;  %s93_s26 = sshll.u32 %s1869_s25, 4  ;;  %s66_s24 = int_to_ptr.vmem [resolvable:$true] %s65_s24  ;;  %s94_s26 = int_to_ptr.vmem [resolvable:$true] %s93_s26 }
  0x12   :  { %s1683_s27 = scalar_lea.vmem %s66_s24, 1024  ;;  %p1688_p6 = scmp.lt.s32.totalorder %s66_s24, %s66_s24 }
  0x13   :  { %p1684_p5 = scmp.ne.s32.totalorder %s66_s24, %s1683_s27  ;;  %p1689_p7 = scmp.lt.s32.totalorder %s1683_s27, %s1683_s27 }
  0x15   :  { %p1690_p8 = por %p1689_p7, %p1688_p6 }
  0x17   :  { %p1691_p9 = pnand %p1690_p8, %p1684_p5 }
  0x19   :  { %1694 = shalt.err (!%p1691_p9)
}
  0x1a   :  { %s1870_s28 = smov 64   ;;  %s1871_s29 = smov 4  }
  0x1b   :  { %71 = dma.hbm_to_vmem [thread:$0]  %s2063_s3, 1024, %s66_s24, [#allocation9], %s1870_s28, %s1870_s28, %s1871_s29  }
  0x1c   :  { %s1703_s1 = scalar_lea.vmem %s94_s26, 1024  ;;  %p1708_p11 = scmp.lt.s32.totalorder %s94_s26, %s94_s26 }
  0x1d   :  { %p1704_p10 = scmp.ne.s32.totalorder %s94_s26, %s1703_s1  ;;  %p1709_p12 = scmp.lt.s32.totalorder %s1703_s1, %s1703_s1 }
  0x1f   :  { %p1710_p13 = por %p1709_p12, %p1708_p11 }
  0x21   :  { %p1711_p0 = pnand %p1710_p13, %p1704_p10 }
  0x23   :  { %1714 = shalt.err (!%p1711_p0)
}
  0x24   :  { %99 = dma.hbm_to_vmem [thread:$0]  %s2067_s7, 1024, %s94_s26, [#allocation12], %s1870_s28, %s1870_s28, %s1871_s29  }
  0x25   :  { %s1872_s19 = smov [#allocation14]   ;;  %s1873_s21 = smov [#allocation2]  }
  0x26   :  { %s121_s20 = sshll.u32 %s1872_s19, 4  ;;  %s31_s3 = sshll.u32 %s1873_s21, 4  ;;  %s122_s20 = int_to_ptr.vmem [resolvable:$true] %s121_s20  ;;  %s32_s3 = int_to_ptr.vmem [resolvable:$true] %s31_s3 }
  0x27   :  { %s1723_s22 = scalar_lea.vmem %s122_s20, 1024  ;;  %p1728_p2 = scmp.lt.s32.totalorder %s122_s20, %s122_s20 }
  0x28   :  { %p1724_p1 = scmp.ne.s32.totalorder %s122_s20, %s1723_s22  ;;  %p1729_p3 = scmp.lt.s32.totalorder %s1723_s22, %s1723_s22 }
  0x2a   :  { %p1730_p4 = por %p1729_p3, %p1728_p2 }
  0x2c   :  { %p1731_p5 = pnand %p1730_p4, %p1724_p1 }
  0x2e   :  { %1734 = shalt.err (!%p1731_p5)
}
  0x2f   :  { %127 = dma.hbm_to_vmem [thread:$0]  %s2071_s11, 1024, %s122_s20, [#allocation15], %s1870_s28, %s1870_s28, %s1871_s29  }
  0x30   :  { %s1743_s7 = scalar_lea.vmem %s32_s3, 256  ;;  %p1748_p7 = scmp.lt.s32.totalorder %s32_s3, %s32_s3 }
  0x31   :  { %p1744_p6 = scmp.ne.s32.totalorder %s32_s3, %s1743_s7  ;;  %p1749_p8 = scmp.lt.s32.totalorder %s1743_s7, %s1743_s7 }
  0x33   :  { %p1750_p9 = por %p1749_p8, %p1748_p7 }
  0x35   :  { %p1751_p10 = pnand %p1750_p9, %p1744_p6 }
  0x37   :  { %1754 = shalt.err (!%p1751_p10)
}
  0x38   :  { %37 = dma.hbm_to_vmem [thread:$0]  %s2060_s0, 256, %s32_s3, [#allocation3], %s1870_s28, %s1870_s28, %s1871_s29  }
  0x39   :  { %s1874_s27 = smov [#allocation7]   ;;  %s1875_s16 = smov [#allocation10]  }
  0x3a   :  { %s53_s30 = sshll.u32 %s1874_s27, 4  ;;  %s79_s11 = sshll.u32 %s1875_s16, 4  ;;  %s54_s30 = int_to_ptr.vmem [resolvable:$true] %s53_s30  ;;  %s80_s11 = int_to_ptr.vmem [resolvable:$true] %s79_s11 }
  0x3b   :  { %s1763_s1 = scalar_lea.vmem %s54_s30, 256  ;;  %p1768_p12 = scmp.lt.s32.totalorder %s54_s30, %s54_s30 }
  0x3c   :  { %p1764_p11 = scmp.ne.s32.totalorder %s54_s30, %s1763_s1  ;;  %p1769_p13 = scmp.lt.s32.totalorder %s1763_s1, %s1763_s1 }
  0x3e   :  { %p1770_p0 = por %p1769_p13, %p1768_p12 }
  0x40   :  { %p1771_p1 = pnand %p1770_p0, %p1764_p11 }
  0x42   :  { %1774 = shalt.err (!%p1771_p1)
}
  0x43   :  { %59 = dma.hbm_to_vmem [thread:$0]  %s2062_s2, 256, %s54_s30, [#allocation6], %s1870_s28, %s1870_s28, %s1871_s29  }
  0x44   :  { %s1783_s0 = scalar_lea.vmem %s80_s11, 1024  ;;  %p1788_p3 = scmp.lt.s32.totalorder %s80_s11, %s80_s11 }
  0x45   :  { %p1784_p2 = scmp.ne.s32.totalorder %s80_s11, %s1783_s0  ;;  %p1789_p4 = scmp.lt.s32.totalorder %s1783_s0, %s1783_s0 }
  0x47   :  { %p1790_p5 = por %p1789_p4, %p1788_p3 }
  0x49   :  { %p1791_p6 = pnand %p1790_p5, %p1784_p2 }
  0x4b   :  { %1794 = shalt.err (!%p1791_p6)
}
  0x4c   :  { %85 = dma.hbm_to_vmem [thread:$0]  %s2065_s5, 1024, %s80_s11, [#allocation9], %s1870_s28, %s1870_s28, %s1871_s29  }
  0x4d   :  { %s1876_s21 = smov [#allocation13]   ;;  %s1877_s22 = smov [#allocation16]  }
  0x4e   :  { %s107_s3 = sshll.u32 %s1876_s21, 4  ;;  %s135_s2 = sshll.u32 %s1877_s22, 4  ;;  %s108_s3 = int_to_ptr.vmem [resolvable:$true] %s107_s3  ;;  %s136_s2 = int_to_ptr.vmem [resolvable:$true] %s135_s2 }
  0x4f   :  { %s1803_s23 = scalar_lea.vmem %s108_s3, 1024  ;;  %p1808_p8 = scmp.lt.s32.totalorder %s108_s3, %s108_s3 }
  0x50   :  { %p1804_p7 = scmp.ne.s32.totalorder %s108_s3, %s1803_s23  ;;  %p1809_p9 = scmp.lt.s32.totalorder %s1803_s23, %s1803_s23 }
  0x52   :  { %p1810_p10 = por %p1809_p9, %p1808_p8 }
  0x54   :  { %p1811_p11 = pnand %p1810_p10, %p1804_p7 }
  0x56   :  { %1814 = shalt.err (!%p1811_p11)
}
  0x57   :  { %113 = dma.hbm_to_vmem [thread:$0]  %s2069_s9, 1024, %s108_s3, [#allocation12], %s1870_s28, %s1870_s28, %s1871_s29  }
  0x58   :  { %s1823_s5 = scalar_lea.vmem %s136_s2, 1024  ;;  %p1828_p13 = scmp.lt.s32.totalorder %s136_s2, %s136_s2 }
  0x59   :  { %p1824_p12 = scmp.ne.s32.totalorder %s136_s2, %s1823_s5  ;;  %p1829_p0 = scmp.lt.s32.totalorder %s1823_s5, %s1823_s5 }
  0x5b   :  { %p1830_p1 = por %p1829_p0, %p1828_p13 }
  0x5d   :  { %p1831_p2 = pnand %p1830_p1, %p1824_p12 }
  0x5f   :  { %1834 = shalt.err (!%p1831_p2)
}
  0x60   :  { %141 = dma.hbm_to_vmem [thread:$0]  %s2073_s13, 1024, %s136_s2, [#allocation15], %s1870_s28, %s1870_s28, %s1871_s29  }
  0x61   :  { %1855 = dma.done.wait [#allocation3], 256  }
  0x62   :  { %1856 = vsyncadd [#allocation3], 4294967040 }
  0x63   :  { %1857 = dma.done.wait [#allocation6], 320  }
  0x64   :  { %1858 = vsyncadd [#allocation6], 4294966976 }
  0x65   :  { %1859 = dma.done.wait [#allocation9], 2048  }
  0x66   :  { %1860 = vsyncadd [#allocation9], 4294965248 }
  0x67   :  { %1861 = dma.done.wait [#allocation12], 2048  }
  0x68   :  { %1862 = vsyncadd [#allocation12], 4294965248 }
  0x69   :  { %1863 = dma.done.wait [#allocation15], 2048  }
  0x6a   :  { %1864 = vsyncadd [#allocation15], 4294965248  ;;  %v1603_v0 = vld [vmem:[#allocation8 + $0x38] sm:$0xff]   ;;  %v1604_v1 = vld [vmem:[#allocation8 + $0x30] sm:$0xff]   ;;  %vm324_vm0 = vcmask 261120   ;;  %vm1879_vm1 = vmmov 0  }
  0x6b   :  { %1421 = vmatprep.subr.bf16.mxu0 %v1603_v0  ;;  %v1605_v2 = vld [vmem:[#allocation8 + $0x28] sm:$0xff]   ;;  %v1606_v3 = vld [vmem:[#allocation8 + $0x20] sm:$0xff]   ;;  %v1611_v4 = vld [vmem:[#allocation7] sm:$0xff]   ;;  %s1880_s11 = smov [#allocation17]  }
  0x6c   :  { %1422 = vmatpush3.bf16.msra.mxu0 %v1603_v0  ;;  %v1607_v5 = vld [vmem:[#allocation8 + $0x18] sm:$0xff]   ;;  %1437 = vmatprep.mubr.bf16.mxu0 %v1611_v4  ;;  %v1608_v6 = vld [vmem:[#allocation8 + $0x10] sm:$0xff]   ;;  %v1609_v7 = vld [vmem:[#allocation8 + $0x8] sm:$0xff]   ;;  %s1257_s1 = sshll.u32 %s1880_s11, 4  ;;  %s1258_s1 = int_to_ptr.vmem [resolvable:$true] %s1257_s1 }
  0x6d   :  { %1423 = vmatprep.subr.bf16.mxu0 %v1604_v1  ;;  %v1610_v8 = vld [vmem:[#allocation8] sm:$0xff]   ;;  %v1612_v9 = vld [vmem:[#allocation7 + $0x8] sm:$0xff]   ;;  %v1616_v12 = vld [vmem:[#allocation10 + $0x30] sm:$0xff]   ;;  %s1835_s17 = scalar_lea.vmem %s1258_s1, 128  ;;  %p1840_p4 = scmp.lt.s32.totalorder %s1258_s1, %s1258_s1 }
  0x6e   :  { %v2012_v10 = vld [vmem:[#allocation2] sm:$0xff]   ;;  %v1617_v13 = vld [vmem:[#allocation10 + $0x28] sm:$0xff]   ;;  %v1620_v23 = vld [vmem:[#allocation10 + $0x10] sm:$0xff]   ;;  %p1836_p3 = scmp.ne.s32.totalorder %s1258_s1, %s1835_s17  ;;  %p1841_p5 = scmp.lt.s32.totalorder %s1835_s17, %s1835_s17 }
  0x6f   :  { %v1615_v11 = vld [vmem:[#allocation10 + $0x38] sm:$0xff]   ;;  %v1618_v14 = vld [vmem:[#allocation10 + $0x20] sm:$0xff]   ;;  %v1621_v24 = vld [vmem:[#allocation10 + $0x8] sm:$0xff]  }
  0x70   :  { %1424 = vmatpush3.bf16.msra.mxu0 %v1604_v1  ;;  %1449 = vmatprep.subr.bf16.mxu1 %v1615_v11  ;;  %v1619_v15 = vld [vmem:[#allocation10 + $0x18] sm:$0xff]   ;;  %v2016_v22 = vld [vmem:[#allocation2 + $0x8] sm:$0xff]   ;;  %v1624_v48 = vld [vmem:[#allocation11 + $0x30] sm:$0xff]   ;;  %p1842_p6 = por %p1841_p5, %p1840_p4 }
  0x71   :  { %1425 = vmatprep.subr.bf16.mxu0 %v1605_v2  ;;  %1450 = vmatpush3.bf16.msra.mxu1 %v1615_v11  ;;  %v1622_v25 = vld [vmem:[#allocation10] sm:$0xff]   ;;  %v1280_v28 = vld [vmem:[%s2064_s4] ss:$0 sm:$0xff]  ;;  %v1625_v49 = vld [vmem:[#allocation11 + $0x28] sm:$0xff]  }
  0x72   :  { %1451 = vmatprep.subr.bf16.mxu1 %v1616_v12  ;;  %v1623_v47 = vld [vmem:[#allocation11 + $0x38] sm:$0xff]   ;;  %v1626_v50 = vld [vmem:[#allocation11 + $0x20] sm:$0xff]   ;;  %v1628_v52 = vld [vmem:[#allocation11 + $0x10] sm:$0xff]   ;;  %p1843_p7 = pnand %p1842_p6, %p1836_p3 }
  0x73   :  { %v1627_v51 = vld [vmem:[#allocation11 + $0x18] sm:$0xff]   ;;  %v1629_v53 = vld [vmem:[#allocation11 + $0x8] sm:$0xff]   ;;  %v1630_v54 = vld [vmem:[#allocation11] sm:$0xff]  }
  0x74   :  { %1426 = vmatpush3.bf16.msra.mxu0 %v1605_v2  ;;  %v1293_v57 = vld [vmem:[%s2066_s6] ss:$0 sm:$0xff] }
  0x75   :  { %1427 = vmatprep.subr.bf16.mxu0 %v1606_v3  ;;  %1452 = vmatpush3.bf16.msra.mxu1 %v1616_v12 }
  0x76   :  { %1453 = vmatprep.subr.bf16.mxu1 %v1617_v13 }
  0x78   :  { %1428 = vmatpush3.bf16.msra.mxu0 %v1606_v3 }
  0x79   :  { %1429 = vmatprep.subr.bf16.mxu0 %v1607_v5  ;;  %1454 = vmatpush3.bf16.msra.mxu1 %v1617_v13  ;;  %v1631_v13 = vld [vmem:[#allocation13 + $0x38] sm:$0xff]  }
  0x7a   :  { %1455 = vmatprep.subr.bf16.mxu1 %v1618_v14 }
  0x7c   :  { %1430 = vmatpush3.bf16.msra.mxu0 %v1607_v5 }
  0x7d   :  { %1431 = vmatprep.subr.bf16.mxu0 %v1608_v6  ;;  %1456 = vmatpush3.bf16.msra.mxu1 %v1618_v14  ;;  %v1632_v14 = vld [vmem:[#allocation13 + $0x30] sm:$0xff]  }
  0x7e   :  { %1457 = vmatprep.subr.bf16.mxu1 %v1619_v15 }
  0x80   :  { %1432 = vmatpush3.bf16.msra.mxu0 %v1608_v6 }
  0x81   :  { %1433 = vmatprep.subr.bf16.mxu0 %v1609_v7  ;;  %1458 = vmatpush3.bf16.msra.mxu1 %v1619_v15  ;;  %v1633_v15 = vld [vmem:[#allocation13 + $0x28] sm:$0xff]  }
  0x82   :  { %1459 = vmatprep.subr.bf16.mxu1 %v1620_v23 }
  0x84   :  { %1434 = vmatpush3.bf16.msra.mxu0 %v1609_v7 }
  0x85   :  { %1435 = vmatprep.subr.bf16.mxu0 %v1610_v8  ;;  %1460 = vmatpush3.bf16.msra.mxu1 %v1620_v23 }
  0x86   :  { %1461 = vmatprep.subr.bf16.mxu1 %v1621_v24 }
  0x88   :  { %1436 = vmatpush3.bf16.msra.mxu0 %v1610_v8 }
  0x89   :  { %1462 = vmatpush3.bf16.msra.mxu1 %v1621_v24  ;;  %v1304_v24 = vld [vmem:[%s2068_s8] ss:$0 sm:$0xff] }
  0x8a   :  { %1463 = vmatprep.subr.bf16.mxu1 %v1622_v25 }
  0x8b   :  { %1438 = vmatmul.mubr.bf16.vlgmr.msra.gmra.mxu0 %v1612_v9 }
  0x8c   :  { %1445 = vmatprep.mubr.msk.bf16.mxu0 %vm324_vm0, %v2012_v10 }
  0x8d   :  { %1464 = vmatpush3.bf16.msra.mxu1 %v1622_v25 }
 0x14b   :  { %v1439_v16 = vpop.f32.mrf.mxu0 }
 0x14d   :  { %v290_v17 = vpop.f32.mrf.mxu0 }
 0x14f   :  { %v1440_v18 = vpop.f32.mrf.mxu0 }
 0x150   :  { %v306_v19 = vpack.c.bf16 %v1440_v18, %v1439_v16  ;;  %v1634_v16 = vld [vmem:[#allocation13 + $0x20] sm:$0xff]   ;;  %v1636_v18 = vld [vmem:[#allocation13 + $0x10] sm:$0xff]  }
 0x151   :  { %v293_v20 = vpop.f32.mrf.mxu0 }
 0x152   :  { %v305_v21 = vpack.c.bf16 %v293_v20, %v290_v17  ;;  %1441 = vmatprep.subr.bf16.mxu0 %v306_v19  ;;  %v1635_v17 = vld [vmem:[#allocation13 + $0x18] sm:$0xff]   ;;  %v1638_v20 = vld [vmem:[#allocation13] sm:$0xff]  }
 0x153   :  { %1442 = vmatpush3.bf16.msra.mxu0 %v306_v19  ;;  %v1637_v19 = vld [vmem:[#allocation13 + $0x8] sm:$0xff]  }
 0x154   :  { %1443 = vmatprep.subr.bf16.mxu0 %v305_v21 }
 0x157   :  { %1444 = vmatpush3.bf16.msra.mxu0 %v305_v21 }
 0x15a   :  { %1446 = vmatmul.mubr.msk.bf16.vlgmr.msra.gmra.mxu0 %vm324_vm0, %v2016_v22 }
 0x15b   :  { %1473 = vmatprep.mubr.msk.bf16.mxu0 %vm324_vm0, %v2012_v10 }
 0x21a   :  { %v1447_v26 = vpop.f32.mrf.mxu0 }
 0x21b   :  { %v374_v32 = vadd.f32 %v1447_v26, %v1280_v28 }
 0x21c   :  { %v365_v27 = vpop.f32.mrf.mxu0 }
 0x21d   :  { %v366_v30 = vadd.f32 %v1280_v28, %v365_v27  ;;  %v382_v38 = vmax.f32 %v374_v32, 0.0 }
 0x21e   :  { %v1448_v29 = vpop.f32.mrf.mxu0 }
 0x21f   :  { %v377_v31 = vadd.f32 %v1448_v29, %v1280_v28  ;;  %v380_v36 = vmax.f32 %v366_v30, 0.0 }
 0x220   :  { %v368_v33 = vpop.f32.mrf.mxu0 }
 0x221   :  { %v369_v34 = vadd.f32 %v1280_v28, %v368_v33  ;;  %v383_v35 = vmax.f32 %v377_v31, 0.0 }
 0x223   :  { %v381_v37 = vmax.f32 %v369_v34, 0.0  ;;  %v385_v40 = vpack.c.bf16 %v383_v35, %v382_v38 }
 0x225   :  { %v384_v39 = vpack.c.bf16 %v381_v37, %v380_v36 }
 0x227   :  { %1465 = vmatprep.mubr.bf16.mxu1 %v384_v39 }
 0x228   :  { %1466 = vmatmul.mubr.bf16.vlgmr.msra.gmra.mxu1 %v385_v40 }
 0x229   :  { %1501 = vmatprep.mubr.msk.bf16.mxu1 %vm324_vm0, %v2012_v10 }
 0x2e8   :  { %v1467_v41 = vpop.f32.mrf.mxu1 }
 0x2ea   :  { %v484_v42 = vpop.f32.mrf.mxu1 }
 0x2ec   :  { %v1468_v43 = vpop.f32.mrf.mxu1 }
 0x2ed   :  { %v500_v44 = vpack.c.bf16 %v1468_v43, %v1467_v41  ;;  %v1639_v43 = vld [vmem:[#allocation14 + $0x38] sm:$0xff]  }
 0x2ee   :  { %v487_v45 = vpop.f32.mrf.mxu1 }
 0x2ef   :  { %v499_v46 = vpack.c.bf16 %v487_v45, %v484_v42  ;;  %1469 = vmatprep.subr.bf16.mxu0 %v500_v44  ;;  %v1641_v45 = vld [vmem:[#allocation14 + $0x28] sm:$0xff]  }
 0x2f0   :  { %1470 = vmatpush3.bf16.msra.mxu0 %v500_v44  ;;  %v1640_v44 = vld [vmem:[#allocation14 + $0x30] sm:$0xff]  }
 0x2f1   :  { %1471 = vmatprep.subr.bf16.mxu0 %v499_v46 }
 0x2f4   :  { %1472 = vmatpush3.bf16.msra.mxu0 %v499_v46  ;;  %v1643_v46 = vld [vmem:[#allocation14 + $0x18] sm:$0xff]  }
 0x2f5   :  { %1477 = vmatprep.subr.bf16.mxu0 %v1623_v47 }
 0x2f7   :  { %1474 = vmatmul.mubr.msk.bf16.vlgmr.msra.gmra.mxu0 %vm324_vm0, %v2016_v22 }
 0x2f8   :  { %1478 = vmatpush3.bf16.msra.mxu0 %v1623_v47  ;;  %v1644_v47 = vld [vmem:[#allocation14 + $0x10] sm:$0xff]  }
 0x2f9   :  { %1479 = vmatprep.subr.bf16.mxu0 %v1624_v48 }
 0x2fc   :  { %1480 = vmatpush3.bf16.msra.mxu0 %v1624_v48  ;;  %v1645_v48 = vld [vmem:[#allocation14 + $0x8] sm:$0xff]  }
 0x2fd   :  { %1481 = vmatprep.subr.bf16.mxu0 %v1625_v49 }
 0x300   :  { %1482 = vmatpush3.bf16.msra.mxu0 %v1625_v49  ;;  %v1646_v49 = vld [vmem:[#allocation14] sm:$0xff]  }
 0x301   :  { %1483 = vmatprep.subr.bf16.mxu0 %v1626_v50 }
 0x304   :  { %1484 = vmatpush3.bf16.msra.mxu0 %v1626_v50 }
 0x305   :  { %1485 = vmatprep.subr.bf16.mxu0 %v1627_v51 }
 0x308   :  { %1486 = vmatpush3.bf16.msra.mxu0 %v1627_v51 }
 0x309   :  { %1487 = vmatprep.subr.bf16.mxu0 %v1628_v52 }
 0x30c   :  { %1488 = vmatpush3.bf16.msra.mxu0 %v1628_v52  ;;  %v1315_v52 = vld [vmem:[%s2070_s10] ss:$0 sm:$0xff] }
 0x30d   :  { %1489 = vmatprep.subr.bf16.mxu0 %v1629_v53 }
 0x310   :  { %1490 = vmatpush3.bf16.msra.mxu0 %v1629_v53 }
 0x311   :  { %1491 = vmatprep.subr.bf16.mxu0 %v1630_v54 }
 0x314   :  { %1492 = vmatpush3.bf16.msra.mxu0 %v1630_v54 }
 0x3b7   :  { %v1475_v55 = vpop.f32.mrf.mxu0 }
 0x3b8   :  { %v551_v61 = vadd.f32 %v1475_v55, %v1293_v57 }
 0x3b9   :  { %v542_v56 = vpop.f32.mrf.mxu0 }
 0x3ba   :  { %v543_v59 = vadd.f32 %v1293_v57, %v542_v56  ;;  %v559_v3 = vmax.f32 %v551_v61, 0.0 }
 0x3bb   :  { %v1476_v58 = vpop.f32.mrf.mxu0 }
 0x3bc   :  { %v554_v60 = vadd.f32 %v1476_v58, %v1293_v57  ;;  %v557_v1 = vmax.f32 %v543_v59, 0.0 }
 0x3bd   :  { %v545_v62 = vpop.f32.mrf.mxu0 }
 0x3be   :  { %v546_v63 = vadd.f32 %v1293_v57, %v545_v62  ;;  %v560_v0 = vmax.f32 %v554_v60, 0.0 }
 0x3c0   :  { %v558_v2 = vmax.f32 %v546_v63, 0.0  ;;  %v562_v5 = vpack.c.bf16 %v560_v0, %v559_v3 }
 0x3c2   :  { %v561_v4 = vpack.c.bf16 %v558_v2, %v557_v1 }
 0x3c4   :  { %1493 = vmatprep.mubr.bf16.mxu0 %v561_v4 }
 0x3c5   :  { %1494 = vmatmul.mubr.bf16.vlgmr.msra.gmra.mxu0 %v562_v5 }
 0x3c6   :  { %1529 = vmatprep.mubr.msk.bf16.mxu0 %vm324_vm0, %v2012_v10 }
 0x485   :  { %v1495_v6 = vpop.f32.mrf.mxu0 }
 0x487   :  { %v661_v7 = vpop.f32.mrf.mxu0 }
 0x489   :  { %v1496_v8 = vpop.f32.mrf.mxu0 }
 0x48a   :  { %v677_v9 = vpack.c.bf16 %v1496_v8, %v1495_v6 }
 0x48b   :  { %v664_v11 = vpop.f32.mrf.mxu0 }
 0x48c   :  { %v676_v12 = vpack.c.bf16 %v664_v11, %v661_v7  ;;  %1497 = vmatprep.subr.bf16.mxu1 %v677_v9  ;;  %v1878_v7 = vmov 0.0  }
 0x48d   :  { %1498 = vmatpush3.bf16.msra.mxu1 %v677_v9  ;;  %v1326_v9 = vld [vmem:[%s2072_s12] ss:$0 sm:$0xff] }
 0x48e   :  { %1499 = vmatprep.subr.bf16.mxu1 %v676_v12 }
 0x491   :  { %1500 = vmatpush3.bf16.msra.mxu1 %v676_v12 }
 0x492   :  { %1505 = vmatprep.subr.bf16.mxu1 %v1631_v13 }
 0x494   :  { %1502 = vmatmul.mubr.msk.bf16.vlgmr.msra.gmra.mxu1 %vm324_vm0, %v2016_v22 }
 0x495   :  { %1506 = vmatpush3.bf16.msra.mxu1 %v1631_v13 }
 0x496   :  { %1507 = vmatprep.subr.bf16.mxu1 %v1632_v14 }
 0x499   :  { %1508 = vmatpush3.bf16.msra.mxu1 %v1632_v14 }
 0x49a   :  { %1509 = vmatprep.subr.bf16.mxu1 %v1633_v15 }
 0x49d   :  { %1510 = vmatpush3.bf16.msra.mxu1 %v1633_v15 }
 0x49e   :  { %1511 = vmatprep.subr.bf16.mxu1 %v1634_v16 }
 0x4a1   :  { %1512 = vmatpush3.bf16.msra.mxu1 %v1634_v16 }
 0x4a2   :  { %1513 = vmatprep.subr.bf16.mxu1 %v1635_v17 }
 0x4a5   :  { %1514 = vmatpush3.bf16.msra.mxu1 %v1635_v17 }
 0x4a6   :  { %1515 = vmatprep.subr.bf16.mxu1 %v1636_v18 }
 0x4a9   :  { %1516 = vmatpush3.bf16.msra.mxu1 %v1636_v18 }
 0x4aa   :  { %1517 = vmatprep.subr.bf16.mxu1 %v1637_v19 }
 0x4ad   :  { %1518 = vmatpush3.bf16.msra.mxu1 %v1637_v19 }
 0x4ae   :  { %1519 = vmatprep.subr.bf16.mxu1 %v1638_v20 }
 0x4b1   :  { %1520 = vmatpush3.bf16.msra.mxu1 %v1638_v20 }
 0x554   :  { %v1503_v21 = vpop.f32.mrf.mxu1 }
 0x555   :  { %v728_v28 = vadd.f32 %v1503_v21, %v1304_v24 }
 0x556   :  { %v719_v23 = vpop.f32.mrf.mxu1 }
 0x557   :  { %v720_v26 = vadd.f32 %v1304_v24, %v719_v23  ;;  %v736_v34 = vmax.f32 %v728_v28, 0.0  ;;  %v1650_v28 = vld [vmem:[#allocation16 + $0x20] sm:$0xff]  }
 0x558   :  { %v1504_v25 = vpop.f32.mrf.mxu1 }
 0x559   :  { %v731_v27 = vadd.f32 %v1504_v25, %v1304_v24  ;;  %v734_v32 = vmax.f32 %v720_v26, 0.0  ;;  %v1647_v25 = vld [vmem:[#allocation16 + $0x38] sm:$0xff]   ;;  %v1648_v26 = vld [vmem:[#allocation16 + $0x30] sm:$0xff]  }
 0x55a   :  { %v722_v29 = vpop.f32.mrf.mxu1 }
 0x55b   :  { %v723_v30 = vadd.f32 %v1304_v24, %v722_v29  ;;  %v737_v31 = vmax.f32 %v731_v27, 0.0  ;;  %v1094_v24 = vld [vmem:[#allocation5] sm:$0xf]  ;;  %v1651_v29 = vld [vmem:[#allocation16 + $0x18] sm:$0xff]  }
 0x55c   :  { %v1649_v27 = vld [vmem:[#allocation16 + $0x28] sm:$0xff]  }
 0x55d   :  { %v735_v33 = vmax.f32 %v723_v30, 0.0  ;;  %v739_v36 = vpack.c.bf16 %v737_v31, %v736_v34  ;;  %v1652_v30 = vld [vmem:[#allocation16 + $0x10] sm:$0xff]   ;;  %v1653_v31 = vld [vmem:[#allocation16 + $0x8] sm:$0xff]  }
 0x55f   :  { %v738_v35 = vpack.c.bf16 %v735_v33, %v734_v32  ;;  %v1654_v32 = vld [vmem:[#allocation16] sm:$0xff]  }
 0x561   :  { %1521 = vmatprep.mubr.bf16.mxu1 %v738_v35 }
 0x562   :  { %1522 = vmatmul.mubr.bf16.vlgmr.msra.gmra.mxu1 %v739_v36 }
 0x563   :  { %1557 = vmatprep.mubr.msk.bf16.mxu1 %vm324_vm0, %v2012_v10  ;;  %v1642_v10 = vld [vmem:[#allocation14 + $0x20] sm:$0xff]  }
 0x622   :  { %v1523_v37 = vpop.f32.mrf.mxu1 }
 0x624   :  { %v838_v38 = vpop.f32.mrf.mxu1 }
 0x626   :  { %v1524_v39 = vpop.f32.mrf.mxu1 }
 0x627   :  { %v854_v40 = vpack.c.bf16 %v1524_v39, %v1523_v37 }
 0x628   :  { %v841_v41 = vpop.f32.mrf.mxu1 }
 0x629   :  { %v853_v42 = vpack.c.bf16 %v841_v41, %v838_v38  ;;  %1525 = vmatprep.subr.bf16.mxu0 %v854_v40  ;;  %v1330_v38 = vld [vmem:[%s2074_s14] ss:$0 sm:$0xff] }
 0x62a   :  { %1526 = vmatpush3.bf16.msra.mxu0 %v854_v40 }
 0x62b   :  { %1527 = vmatprep.subr.bf16.mxu0 %v853_v42 }
 0x62e   :  { %1528 = vmatpush3.bf16.msra.mxu0 %v853_v42 }
 0x62f   :  { %1533 = vmatprep.subr.bf16.mxu0 %v1639_v43 }
 0x631   :  { %1530 = vmatmul.mubr.msk.bf16.vlgmr.msra.gmra.mxu0 %vm324_vm0, %v2016_v22 }
 0x632   :  { %1534 = vmatpush3.bf16.msra.mxu0 %v1639_v43 }
 0x633   :  { %1535 = vmatprep.subr.bf16.mxu0 %v1640_v44 }
 0x636   :  { %1536 = vmatpush3.bf16.msra.mxu0 %v1640_v44 }
 0x637   :  { %1537 = vmatprep.subr.bf16.mxu0 %v1641_v45 }
 0x63a   :  { %1538 = vmatpush3.bf16.msra.mxu0 %v1641_v45 }
 0x63b   :  { %1539 = vmatprep.subr.bf16.mxu0 %v1642_v10 }
 0x63e   :  { %1540 = vmatpush3.bf16.msra.mxu0 %v1642_v10 }
 0x63f   :  { %1541 = vmatprep.subr.bf16.mxu0 %v1643_v46 }
 0x642   :  { %1542 = vmatpush3.bf16.msra.mxu0 %v1643_v46 }
 0x643   :  { %1543 = vmatprep.subr.bf16.mxu0 %v1644_v47 }
 0x646   :  { %1544 = vmatpush3.bf16.msra.mxu0 %v1644_v47 }
 0x647   :  { %1545 = vmatprep.subr.bf16.mxu0 %v1645_v48 }
 0x64a   :  { %1546 = vmatpush3.bf16.msra.mxu0 %v1645_v48 }
 0x64b   :  { %1547 = vmatprep.subr.bf16.mxu0 %v1646_v49 }
 0x64e   :  { %1548 = vmatpush3.bf16.msra.mxu0 %v1646_v49 }
 0x6f1   :  { %v1531_v50 = vpop.f32.mrf.mxu0 }
 0x6f2   :  { %v905_v56 = vadd.f32 %v1531_v50, %v1315_v52 }
 0x6f3   :  { %v896_v51 = vpop.f32.mrf.mxu0 }
 0x6f4   :  { %v897_v54 = vadd.f32 %v1315_v52, %v896_v51  ;;  %v913_v62 = vmax.f32 %v905_v56, 0.0 }
 0x6f5   :  { %v1532_v53 = vpop.f32.mrf.mxu0 }
 0x6f6   :  { %v908_v55 = vadd.f32 %v1532_v53, %v1315_v52  ;;  %v911_v60 = vmax.f32 %v897_v54, 0.0 }
 0x6f7   :  { %v899_v57 = vpop.f32.mrf.mxu0 }
 0x6f8   :  { %v900_v58 = vadd.f32 %v1315_v52, %v899_v57  ;;  %v914_v59 = vmax.f32 %v908_v55, 0.0 }
 0x6fa   :  { %v912_v61 = vmax.f32 %v900_v58, 0.0  ;;  %v916_v0 = vpack.c.bf16 %v914_v59, %v913_v62 }
 0x6fc   :  { %v915_v63 = vpack.c.bf16 %v912_v61, %v911_v60 }
 0x6fe   :  { %1549 = vmatprep.mubr.bf16.mxu0 %v915_v63 }
 0x6ff   :  { %1550 = vmatmul.mubr.bf16.vlgmr.msra.gmra.mxu0 %v916_v0 }
 0x7bf   :  { %v1551_v1 = vpop.f32.mrf.mxu0 }
 0x7c1   :  { %v1015_v2 = vpop.f32.mrf.mxu0 }
 0x7c3   :  { %v1552_v3 = vpop.f32.mrf.mxu0 }
 0x7c4   :  { %v1031_v4 = vpack.c.bf16 %v1552_v3, %v1551_v1 }
 0x7c5   :  { %v1018_v5 = vpop.f32.mrf.mxu0 }
 0x7c6   :  { %v1030_v6 = vpack.c.bf16 %v1018_v5, %v1015_v2  ;;  %1553 = vmatprep.subr.bf16.mxu1 %v1031_v4 }
 0x7c7   :  { %1554 = vmatpush3.bf16.msra.mxu1 %v1031_v4 }
 0x7c8   :  { %1555 = vmatprep.subr.bf16.mxu1 %v1030_v6 }
 0x7cb   :  { %1556 = vmatpush3.bf16.msra.mxu1 %v1030_v6 }
 0x7cc   :  { %1561 = vmatprep.subr.bf16.mxu1 %v1878_v7 }
 0x7ce   :  { %1558 = vmatmul.mubr.msk.bf16.vlgmr.msra.gmra.mxu1 %vm324_vm0, %v2016_v22 }
 0x7cf   :  { %1565 = vmatprep.mubr.msk.bf16.mxu1 %vm1879_vm1, %v1878_v7 }
 0x88e   :  { %v1559_v8 = vpop.f32.mrf.mxu1 }
 0x88f   :  { %v1082_v12 = vadd.f32 %v1559_v8, %v1326_v9 }
 0x890   :  { %v1073_v11 = vpop.f32.mrf.mxu1 }
 0x891   :  { %v1090_v16 = vmax.f32 %v1082_v12, 0.0  ;;  %v1074_v17 = vadd.f32 %v1326_v9, %v1073_v11 }
 0x892   :  { %v1560_v13 = vpop.f32.mrf.mxu1 }
 0x893   :  { %v1085_v14 = vadd.f32 %v1560_v13, %v1326_v9  ;;  %v1088_v21 = vmax.f32 %v1074_v17, 0.0 }
 0x894   :  { %v1076_v15 = vpop.f32.mrf.mxu1 }
 0x895   :  { %v1091_v18 = vmax.f32 %v1085_v14, 0.0  ;;  %v1077_v19 = vadd.f32 %v1326_v9, %v1076_v15 }
 0x897   :  { %v1093_v22 = vpack.c.bf16 %v1091_v18, %v1090_v16  ;;  %v1089_v20 = vmax.f32 %v1077_v19, 0.0 }
 0x899   :  { %1562 = vmatpush3.bf16.msra.mxu1 %v1093_v22  ;;  %v1092_v23 = vpack.c.bf16 %v1089_v20, %v1088_v21 }
 0x89a   :  { %1563 = vmatprep.subr.bf16.mxu1 %v1878_v7 }
 0x89d   :  { %1564 = vmatpush3.bf16.msra.mxu1 %v1092_v23 }
 0x89e   :  { %1569 = vmatprep.subr.bf16.mxu1 %v1878_v7 }
 0x8a0   :  { %1566 = vmatmul.mubr.msk.bf16.vlgmr.msra.gmra.mxu1 %vm324_vm0, %v1094_v24 }
 0x8a1   :  { %1570 = vmatpush3.bf16.msra.mxu1 %v1647_v25  ;;  %1585 = vmatprep.mubr.msk.bf16.mxu1 %vm1879_vm1, %v1878_v7 }
 0x8a2   :  { %1571 = vmatprep.subr.bf16.mxu1 %v1878_v7 }
 0x8a5   :  { %1572 = vmatpush3.bf16.msra.mxu1 %v1648_v26 }
 0x8a6   :  { %1573 = vmatprep.subr.bf16.mxu1 %v1878_v7 }
 0x8a9   :  { %1574 = vmatpush3.bf16.msra.mxu1 %v1649_v27 }
 0x8aa   :  { %1575 = vmatprep.subr.bf16.mxu1 %v1878_v7 }
 0x8ad   :  { %1576 = vmatpush3.bf16.msra.mxu1 %v1650_v28 }
 0x8ae   :  { %1577 = vmatprep.subr.bf16.mxu1 %v1878_v7 }
 0x8b1   :  { %1578 = vmatpush3.bf16.msra.mxu1 %v1651_v29 }
 0x8b2   :  { %1579 = vmatprep.subr.bf16.mxu1 %v1878_v7 }
 0x8b5   :  { %1580 = vmatpush3.bf16.msra.mxu1 %v1652_v30 }
 0x8b6   :  { %1581 = vmatprep.subr.bf16.mxu1 %v1878_v7 }
 0x8b9   :  { %1582 = vmatpush3.bf16.msra.mxu1 %v1653_v31 }
 0x8ba   :  { %1583 = vmatprep.subr.bf16.mxu1 %v1878_v7 }
 0x8bd   :  { %1584 = vmatpush3.bf16.msra.mxu1 %v1654_v32 }
 0x960   :  { %v1132_v33 = vpop.f32.mrf.mxu1 }
 0x961   :  { %v1138_v34 = vpack.c.bf16 %v1132_v33, %v1132_v33 }
 0x962   :  { %v1567_v35 = vpop.f32.mrf.mxu1 }
 0x963   :  { %1586 = vmatmul.mubr.bf16.vlgmr.msra.gmra.mxu1 %v1138_v34 }
 0x964   :  { %v1135_v36 = vpop.f32.mrf.mxu1 }
 0x966   :  { %v1568_v37 = vpop.f32.mrf.mxu1 }
 0xa23   :  { %v1244_v39 = vpop.f32.mrf.mxu1 }
 0xa24   :  { %v1245_v40 = vadd.f32 %v1330_v38, %v1244_v39 }
 0xa25   :  { %v1587_v41 = vpop.f32.mrf.mxu1 }
 0xa26   :  { %1250 = vst [vmem:[#allocation17] sm:$0xff] %v1245_v40 }
 0xa27   :  { %v1247_v42 = vpop.f32.mrf.mxu1 }
 0xa28   :  { %1846 = shalt.err (!%p1843_p7)
}
 0xa29   :  { %1260 = dma.vmem_to_hbm [thread:$0]  %s1258_s1, 128, %s2075_s15, [#allocation4]   ;;  %v1588_v43 = vpop.f32.mrf.mxu1 }
 0xa2a   :  { %1865 = dma.done.wait [#allocation4], 128  }
 0xa2b   :  { %1866 = vsyncadd [#allocation4], 4294967168 }
 0xa2c   :  { %1264 = vsyncpa [#allocation3], 1 }
 0xa2d   :  { %1265 = vsyncpa [#allocation6], 1 }
 0xa2e   :  { %1266 = vsyncpa [#allocation9], 1 }
 0xa2f   :  { %1267 = vsyncpa [#allocation12], 1 }
 0xa30   :  { %1268 = vsyncpa [#allocation15], 1 }
 0xa31   :  { %1269 = vsyncpa [#allocation4], 1 }

</bundles_post_ra>
